<compile_context>
chip_gen: v5e
topology: v5e:2x2
jax: 0.10.0
libtpu: 0.0.40
codegen_flags: <defaults>
</compile_context>

<pallas_src>
import functools

import jax
import jax.numpy as jnp
from jax.experimental import pallas as pl
from jax.experimental.pallas import tpu as pltpu


def _round_up(v, m):
    return ((v + m - 1) // m) * m


def _linear_kernel(x_ref, w_ref, b_ref, o_ref):
    """One (tm, tn) output tile: full-K bf16 matmul on the MXU + f32 bias add."""
    acc = jnp.dot(x_ref[...], w_ref[...], preferred_element_type=jnp.float32)
    o_ref[...] = (acc + b_ref[...]).astype(o_ref.dtype)


@functools.partial(jax.jit, static_argnames=("tm", "tn"))
def _linear_pallas(x_bf, w_bf, b2d, *, tm, tn):
    B, D = x_bf.shape
    _, Np = w_bf.shape
    n_blk = pl.cdiv(Np, tn)
    m_blk = pl.cdiv(B, tm)

    cost = pl.CostEstimate(
        flops=2 * B * D * Np,
        transcendentals=0,
        # x re-fetched once per N block; weight/bias resident across M sweep.
        bytes_accessed=(B * D * 2) * n_blk + D * Np * 2 + Np * 4 + B * Np * 4,
    )

    return pl.pallas_call(
        _linear_kernel,
        out_shape=jax.ShapeDtypeStruct((B, Np), jnp.float32),
        grid_spec=pltpu.PrefetchScalarGridSpec(
            num_scalar_prefetch=0,
            # N outer / M inner: weight + bias blocks stay resident while the
            # batch is swept (their index_map result doesn't change).
            grid=(n_blk, m_blk),
            in_specs=[
                pl.BlockSpec((tm, D), lambda j, i: (i, 0)),   # x tile (full K)
                pl.BlockSpec((D, tn), lambda j, i: (0, j)),   # weight tile (full K)
                pl.BlockSpec((1, tn), lambda j, i: (0, j)),   # bias tile
            ],
            out_specs=pl.BlockSpec((tm, tn), lambda j, i: (i, j)),
        ),
        compiler_params=pltpu.CompilerParams(
            dimension_semantics=("parallel", "parallel"),
        ),
        cost_estimate=cost,
    )(x_bf, w_bf, b2d)


def prepare_params(weight, bias):
    """One-time parameter prep (do NOT do this per call).

    weight: (N, D) PyTorch nn.Linear layout, f32
    bias:   (N,)   f32
    Returns (w_bf (D, Np) bf16, b2d (1, Np) f32, N) with Np = round_up(N, 128).
    """
    N, D = weight.shape
    Np = _round_up(N, 128)
    w_bf = jnp.zeros((D, Np), jnp.bfloat16).at[:, :N].set(
        weight.T.astype(jnp.bfloat16))
    b2d = jnp.zeros((1, Np), jnp.float32).at[:, :N].set(
        bias.astype(jnp.float32))
    return w_bf, b2d, N


def _default_n_blocks():
    # 2-way N split only pays off with 2 TensorCores/chip (v7x); on v5e/v6e a
    # single unbroken weight block avoids extra grid-step overhead.
    try:
        kind = (jax.devices()[0].device_kind or "").lower()
    except Exception:
        kind = ""
    return 2 if "v7" in kind else 1


def soft_quantizer_v3_forward(x, w_bf, b2d, n_valid=None, *, tm=None, tn=None):
    """soft_quantizer_v3.forward: Linear(embed_dim -> num_higher_output).

    x:      (B, D)  activations (cast to bf16 for the MXU; f32 accumulate)
    w_bf:   (D, Np) pre-transposed, lane-padded, bf16 weight (prepare_params)
    b2d:    (1, Np) f32 bias (lane-padded)
    n_valid: true N before padding; output sliced back to (B, n_valid)
    """
    B, D = x.shape
    Dw, Np = w_bf.shape
    assert D == Dw and b2d.shape == (1, Np)
    if n_valid is None:
        n_valid = Np

    if tm is None:
        # bf16 LHS packs 16 rows per vreg; cap at 256 (MXU M on v6e/v7x).
        tm = min(_round_up(B, 16) if B >= 16 else _round_up(B, 8), 256)
    if tn is None:
        tn = _round_up(pl.cdiv(Np, _default_n_blocks()), 128)
    tn = min(_round_up(tn, 128), Np)  # robustness: keep tn lane-aligned

    out = _linear_pallas(x.astype(jnp.bfloat16), w_bf, b2d, tm=tm, tn=tn)
    return out[:, :n_valid] if n_valid != Np else out


if __name__ == "__main__":
    # Small shapes consistent with the module (embed_dim -> num_higher_output).
    B = 8              # batch of image vectors
    embed_dim = 128    # scaled-down from 512
    num_higher_output = 256  # scaled-down from 1000

    key = jax.random.PRNGKey(0)
    kx, kw, kb = jax.random.split(key, 3)

    # Deterministic synthetic parameters (mimics nn.Linear's uniform init scale).
    bound = 1.0 / jnp.sqrt(embed_dim)
    weight = jax.random.uniform(
        kw, (num_higher_output, embed_dim), jnp.float32, -bound, bound
    )  # PyTorch layout (N, D)
    bias = jax.random.uniform(kb, (num_higher_output,), jnp.float32, -bound, bound)

    x = jax.random.normal(kx, (B, embed_dim), jnp.float32)

    # One-time parameter prep (transpose + lane-pad + bf16 cast).
    w_bf, b2d, n_valid = prepare_params(weight, bias)

    out = soft_quantizer_v3_forward(x, w_bf, b2d, n_valid)
    out = jax.block_until_ready(out)

    # Reference with the same bf16 input rounding + f32 accumulation.
    # (Note: intentionally lower precision than PyTorch's f32 nn.Linear.)
    x_r = x.astype(jnp.bfloat16).astype(jnp.float32)
    w_r = weight.T.astype(jnp.bfloat16).astype(jnp.float32)
    ref = x_r @ w_r + bias

    assert out.shape == (B, num_higher_output)
    assert jnp.allclose(out, ref, atol=1e-3, rtol=1e-3), "mismatch vs reference"

    print("KERNEL_OK")
</pallas_src>

<mosaic_0001>
module attributes {stable_mosaic.version = 11 : i64} {
  func.func @_linear_kernel(%arg0: i32, %arg1: i32, %arg2: memref<8x128xbf16, #tpu.memory_space<vmem>>, %arg3: memref<128x256xbf16, #tpu.memory_space<vmem>>, %arg4: memref<1x256xf32, #tpu.memory_space<vmem>>, %arg5: memref<8x256xf32, #tpu.memory_space<vmem>>) attributes {dimension_semantics = [#tpu.dimension_semantics<parallel>, #tpu.dimension_semantics<parallel>], iteration_bounds = array<i64: 1, 1>, scalar_prefetch = 0 : i64, scratch_operands = 0 : i64, tpu.core_type = #tpu.core_type<tc>, window_params = [{transform_indices = @transform_0, window_bounds = array<i64: 8, 128>}, {transform_indices = @transform_1, window_bounds = array<i64: 128, 256>}, {transform_indices = @transform_2, window_bounds = array<i64: 1, 256>}, {transform_indices = @transform_3, window_bounds = array<i64: 8, 256>}]} {
    %c0 = arith.constant 0 : index
    %c0_0 = arith.constant 0 : index
    %0 = vector.load %arg2[%c0, %c0_0] : memref<8x128xbf16, #tpu.memory_space<vmem>>, vector<8x128xbf16>
    %c0_1 = arith.constant 0 : index
    %c0_2 = arith.constant 0 : index
    %1 = vector.load %arg3[%c0_1, %c0_2] : memref<128x256xbf16, #tpu.memory_space<vmem>>, vector<128x256xbf16>
    %cst = arith.constant dense<0.000000e+00> : vector<8x256xf32>
    %2 = tpu.matmul %0, %1, %cst {dimension_numbers = #tpu.dot_dimension_numbers<[1], [0], [0], [1], [0, 0, 1, 1], [], []>} : vector<8x128xbf16>, vector<128x256xbf16>, vector<8x256xf32> -> vector<8x256xf32>
    %c0_3 = arith.constant 0 : index
    %c0_4 = arith.constant 0 : index
    %3 = vector.load %arg4[%c0_3, %c0_4] : memref<1x256xf32, #tpu.memory_space<vmem>>, vector<1x256xf32>
    %4 = vector.broadcast %3 : vector<1x256xf32> to vector<8x256xf32>
    %5 = arith.addf %2, %4 : vector<8x256xf32>
    %c0_5 = arith.constant 0 : index
    %c0_6 = arith.constant 0 : index
    %6 = vector.load %arg5[%c0_5, %c0_6] : memref<8x256xf32, #tpu.memory_space<vmem>>, vector<8x256xf32>
    tpu.vector_store %arg5[%c0_5, %c0_6], %5 {strides = array<i32>} : memref<8x256xf32, #tpu.memory_space<vmem>>, vector<8x256xf32>,
    return
  }
  func.func @transform_0(%arg0: i32, %arg1: i32) -> (i32, i32) {
    %c0_i32 = arith.constant 0 : i32
    %c0_i32_0 = arith.constant 0 : i32
    return %arg1, %c0_i32 : i32, i32
  }
  func.func @transform_1(%arg0: i32, %arg1: i32) -> (i32, i32) {
    %c0_i32 = arith.constant 0 : i32
    %c0_i32_0 = arith.constant 0 : i32
    return %c0_i32, %arg0 : i32, i32
  }
  func.func @transform_2(%arg0: i32, %arg1: i32) -> (i32, i32) {
    %c0_i32 = arith.constant 0 : i32
    %c0_i32_0 = arith.constant 0 : i32
    return %c0_i32, %arg0 : i32, i32
  }
  func.func @transform_3(%arg0: i32, %arg1: i32) -> (i32, i32) {
    %c0_i32 = arith.constant 0 : i32
    return %arg1, %arg0 : i32, i32
  }
}

</mosaic_0001>

<bundles_post_ra>
// kernel: _linear_pallas.1
= control target key start
LH: loop header
LB: loop body
LE: loop exit
PB: predicated region body
PF: predicated region fallthrough
CT: control target
= control target key end

     0   :  { %8 = vsyncpa [#allocation3], 0  ;;  %s433_s0 = inlined_call_operand.hbm [shape: bf16[8,128], index: 0, kind: input, shape index: {}]   ;;  %s434_s1 = inlined_call_operand.hbm [shape: bf16[128,256], index: 1, kind: input, shape index: {}]   ;;  %s435_s2 = inlined_call_operand.hbm [shape: f32[1,256], index: 2, kind: input, shape index: {}]   ;;  %s436_s3 = inlined_call_operand.hbm [shape: f32[8,256], index: 3, kind: output, shape index: {}]  }
   0x1   :  { %9 = vsyncpa [#allocation6], 0  ;;  %s26_s14 = sshll.u32 %s434_s1, 4  ;;  %s27_s14 = int_to_ptr.hbm [resolvable:$true] %s26_s14 }
   0x2   :  { %10 = vsyncpa [#allocation4], 0  ;;  %s395_s15 = smov [#allocation5]   ;;  %s16_s19 = sshll.u32 %s433_s0, 4  ;;  %s17_s19 = int_to_ptr.hbm [resolvable:$true] %s16_s19 }
   0x3   :  { %s28_s16 = sshll.u32 %s395_s15, 4  ;;  %s396_s20 = smov 128   ;;  %s29_s16 = int_to_ptr.vmem [resolvable:$true] %s28_s16 }
   0x4   :  { %s397_s21 = smov 8   ;;  %s398_s22 = smov [#allocation2]  }
   0x5   :  { %34 = dma.hbm_to_vmem [thread:$0]  %s27_s14, 2048, %s29_s16, [#allocation6], %s396_s20, %s396_s20, %s397_s21  }
   0x6   :  { %s18_s23 = sshll.u32 %s398_s22, 4  ;;  %s40_s26 = sshll.u32 %s435_s2, 4  ;;  %s19_s23 = int_to_ptr.vmem [resolvable:$true] %s18_s23  ;;  %s41_s26 = int_to_ptr.hbm [resolvable:$true] %s40_s26 }
   0x7   :  { %21 = dma.hbm_to_vmem [thread:$0]  %s17_s19, 64, %s19_s23, [#allocation3]  }
   0x8   :  { %s399_s1 = smov [#allocation7]  }
   0x9   :  { %s42_s27 = sshll.u32 %s399_s1, 4  ;;  %s43_s27 = int_to_ptr.vmem [resolvable:$true] %s42_s27 }
   0xa   :  { %45 = dma.hbm_to_vmem [thread:$0]  %s41_s26, 32, %s43_s27, [#allocation6]  }
   0xb   :  { %389 = dma.done.wait [#allocation3], 64  }
   0xc   :  { %390 = vsyncadd [#allocation3], 4294967232 }
   0xd   :  { %391 = dma.done.wait [#allocation6], 2080  }
   0xe   :  { %392 = vsyncadd [#allocation6], 4294965216  ;;  %v265_v0 = vld [vmem:[#allocation5 + $0x70] sm:$0xf]  ;;  %v286_v1 = vld [vmem:[#allocation5 + $0x74] sm:$0xf0] }
   0xf   :  { %v285_v2 = vld [vmem:[#allocation5 + $0x74] sm:$0xf]  ;;  %v266_v3 = vor.u32 %v286_v1, %v265_v0  ;;  %v267_v4 = vld [vmem:[#allocation5 + $0x78] sm:$0xf0]  ;;  %v257_v5 = vld [vmem:[#allocation5 + $0x60] sm:$0xf] }
  0x10   :  { %v284_v6 = vld [vmem:[#allocation5 + $0x64] sm:$0xf0]  ;;  %v270_v7 = vor.u32 %v285_v2, %v267_v4  ;;  %v283_v8 = vld [vmem:[#allocation5 + $0x64] sm:$0xf]  ;;  %v259_v9 = vld [vmem:[#allocation5 + $0x68] sm:$0xf0] }
  0x11   :  { %161 = vmatpush.bf16.msra.mxu0 %v266_v3  ;;  %v258_v10 = vor.u32 %v284_v6, %v257_v5  ;;  %v262_v11 = vor.u32 %v283_v8, %v259_v9  ;;  %v249_v12 = vld [vmem:[#allocation5 + $0x50] sm:$0xf]  ;;  %v282_v13 = vld [vmem:[#allocation5 + $0x54] sm:$0xf0]  ;;  %v281_v14 = vld [vmem:[#allocation5 + $0x54] sm:$0xf] }
  0x12   :  { %174 = vmatpush.bf16.msra.mxu1 %v270_v7  ;;  %v251_v15 = vld [vmem:[#allocation5 + $0x58] sm:$0xf0]  ;;  %v250_v16 = vor.u32 %v282_v13, %v249_v12  ;;  %v241_v18 = vld [vmem:[#allocation5 + $0x40] sm:$0xf]  ;;  %v280_v19 = vld [vmem:[#allocation5 + $0x44] sm:$0xf0] }
  0x13   :  { %v254_v17 = vor.u32 %v281_v14, %v251_v15  ;;  %v279_v20 = vld [vmem:[#allocation5 + $0x44] sm:$0xf]  ;;  %v243_v21 = vld [vmem:[#allocation5 + $0x48] sm:$0xf0]  ;;  %v242_v22 = vor.u32 %v280_v19, %v241_v18  ;;  %v233_v24 = vld [vmem:[#allocation5 + $0x30] sm:$0xf] }
  0x14   :  { %v246_v23 = vor.u32 %v279_v20, %v243_v21  ;;  %v278_v25 = vld [vmem:[#allocation5 + $0x34] sm:$0xf0]  ;;  %v277_v26 = vld [vmem:[#allocation5 + $0x34] sm:$0xf]  ;;  %v235_v27 = vld [vmem:[#allocation5 + $0x38] sm:$0xf0] }
  0x15   :  { %162 = vmatpush.bf16.msra.mxu0 %v258_v10  ;;  %v234_v28 = vor.u32 %v278_v25, %v233_v24  ;;  %v238_v29 = vor.u32 %v277_v26, %v235_v27  ;;  %v225_v30 = vld [vmem:[#allocation5 + $0x20] sm:$0xf]  ;;  %v276_v31 = vld [vmem:[#allocation5 + $0x24] sm:$0xf0]  ;;  %v275_v32 = vld [vmem:[#allocation5 + $0x24] sm:$0xf] }
  0x16   :  { %175 = vmatpush.bf16.msra.mxu1 %v262_v11  ;;  %v227_v33 = vld [vmem:[#allocation5 + $0x28] sm:$0xf0]  ;;  %v226_v34 = vor.u32 %v276_v31, %v225_v30  ;;  %v217_v36 = vld [vmem:[#allocation5 + $0x10] sm:$0xf]  ;;  %v274_v37 = vld [vmem:[#allocation5 + $0x14] sm:$0xf0] }
  0x17   :  { %v230_v35 = vor.u32 %v275_v32, %v227_v33  ;;  %v273_v38 = vld [vmem:[#allocation5 + $0x14] sm:$0xf]  ;;  %v219_v39 = vld [vmem:[#allocation5 + $0x18] sm:$0xf0]  ;;  %v218_v40 = vor.u32 %v274_v37, %v217_v36  ;;  %v209_v42 = vld [vmem:[#allocation5] sm:$0xf] }
  0x18   :  { %v222_v41 = vor.u32 %v273_v38, %v219_v39  ;;  %v272_v43 = vld [vmem:[#allocation5 + $0x4] sm:$0xf0]  ;;  %v271_v44 = vld [vmem:[#allocation5 + $0x4] sm:$0xf]  ;;  %v211_v45 = vld [vmem:[#allocation5 + $0x8] sm:$0xf0] }
  0x19   :  { %163 = vmatpush.bf16.msra.mxu0 %v250_v16  ;;  %v210_v46 = vor.u32 %v272_v43, %v209_v42  ;;  %v214_v47 = vor.u32 %v271_v44, %v211_v45  ;;  %v58_v48 = vld [vmem:[#allocation2] sm:$0xf]  ;;  %v75_v49 = vld [vmem:[#allocation7] sm:$0x3]  ;;  %s400_s0 = smov [#allocation8]   ;;  %s196_s30 = sshll.u32 %s436_s3, 4  ;;  %s197_s30 = int_to_ptr.hbm [resolvable:$true] %s196_s30 }
  0x1a   :  { %176 = vmatpush.bf16.msra.mxu1 %v254_v17  ;;  %v77_v50 = vperm.slane %v75_v49, 0  ;;  %v78_v51 = vperm.slane %v75_v49, 1  ;;  %s194_s2 = sshll.u32 %s400_s0, 4  ;;  %s195_s2 = int_to_ptr.vmem [resolvable:$true] %s194_s2 }
  0x1d   :  { %164 = vmatpush.bf16.msra.mxu0 %v242_v22 }
  0x1e   :  { %177 = vmatpush.bf16.msra.mxu1 %v246_v23 }
  0x21   :  { %165 = vmatpush.bf16.msra.mxu0 %v234_v28 }
  0x22   :  { %178 = vmatpush.bf16.msra.mxu1 %v238_v29 }
  0x25   :  { %166 = vmatpush.bf16.msra.mxu0 %v226_v34 }
  0x26   :  { %179 = vmatpush.bf16.msra.mxu1 %v230_v35 }
  0x29   :  { %167 = vmatpush.bf16.msra.mxu0 %v218_v40 }
  0x2a   :  { %180 = vmatpush.bf16.msra.mxu1 %v222_v41 }
  0x2d   :  { %168 = vmatpush.bf16.msra.mxu0 %v210_v46 }
  0x2e   :  { %181 = vmatpush.bf16.msra.mxu1 %v214_v47 }
  0x30   :  { %169 = vmatmul.bf16.vlgmr.msra.gmra.mxu0 %v58_v48 }
  0x31   :  { %182 = vmatmul.bf16.vlgmr.msra.gmra.mxu1 %v58_v48 }
  0xad   :  { %v170_v52 = vpop.f32.mrf.mxu0 }
  0xae   :  { %v171_v53 = vadd.f32 %v170_v52, %v77_v50  ;;  %v183_v54 = vpop.f32.mrf.mxu1 }
  0xaf   :  { %v184_v55 = vadd.f32 %v183_v54, %v78_v51 }
  0xb0   :  { %187 = vst [vmem:[#allocation8] sm:$0xff] %v171_v53 }
  0xb1   :  { %188 = vst [vmem:[#allocation8 + $0x8] sm:$0xff] %v184_v55 }
  0xb2   :  { %199 = dma.vmem_to_hbm [thread:$0]  %s195_s2, 256, %s197_s30, [#allocation4]  }
  0xb5   :  { %v172_v56 = vpop.f32.mrf.mxu0 }
  0xb6   :  { %v185_v57 = vpop.f32.mrf.mxu1 }
  0xb7   :  { %393 = dma.done.wait [#allocation4], 256  }
  0xb8   :  { %394 = vsyncadd [#allocation4], 4294967040 }
  0xb9   :  { %204 = vsyncpa [#allocation3], 1 }
  0xba   :  { %205 = vsyncpa [#allocation6], 1 }
  0xbb   :  { %206 = vsyncpa [#allocation4], 1 }

</bundles_post_ra>
